<compile_context>
chip_gen: v7x
topology: tpu7x:2x2x1
jax: 0.10.0
libtpu: 0.0.40
codegen_flags: <defaults>
</compile_context>

<pallas_src>
import functools

import jax
import jax.numpy as jnp
from jax import lax
from jax.experimental import pallas as pl
from jax.experimental.pallas import tpu as pltpu

COMPRESSED = 64
BOTTLENECK = 1024


def _linear_kernel(x_ref, w_ref, b_ref, o_ref):
    # x_ref: (Bt, K) ; w_ref: (N, K) native nn.Linear layout ; b_ref: (1, N) ; o_ref: (Bt, N)
    acc = lax.dot_general(
        x_ref[...], w_ref[...],
        dimension_numbers=(((1,), (1,)), ((), ())),   # contract K with K -> (Bt, N)
        preferred_element_type=jnp.float32,
    )
    o_ref[...] = (acc + b_ref[...]).astype(o_ref.dtype)


@functools.partial(jax.jit, static_argnames=("block_b",))
def channel_decoder_forward(x, w, b, *, block_b=256):
    """y = x @ w.T + b.

    x: (B, COMPRESSED)          activations
    w: (BOTTLENECK, COMPRESSED) weight in native nn.Linear layout (f32 or bf16)
    b: (BOTTLENECK,)            bias (f32)
    """
    B, K = x.shape
    N, K2 = w.shape
    assert K == K2, (K, K2)
    b2d = b.reshape(1, N).astype(jnp.float32)

    itemsize = lambda a: a.dtype.itemsize
    cost = pl.CostEstimate(
        flops=2 * B * K * N,
        transcendentals=0,
        bytes_accessed=(x.size * itemsize(x) + w.size * itemsize(w)
                        + b2d.size * itemsize(b2d) + B * N * itemsize(x)),
    )

    if B <= block_b:
        # Single VMEM-resident block, no grid: the whole problem fits VMEM on every
        # generation, so tiling would only add per-step pipeline overhead.
        return pl.pallas_call(
            _linear_kernel,
            out_shape=jax.ShapeDtypeStruct((B, N), x.dtype),
            in_specs=[
                pl.BlockSpec((B, K), lambda: (0, 0), memory_space=pltpu.VMEM),
                pl.BlockSpec((N, K), lambda: (0, 0), memory_space=pltpu.VMEM),
                pl.BlockSpec((1, N), lambda: (0, 0), memory_space=pltpu.VMEM),
            ],
            out_specs=pl.BlockSpec((B, N), lambda: (0, 0), memory_space=pltpu.VMEM),
            cost_estimate=cost,
        )(x, w, b2d)

    # Large-B fallback: tile over the batch axis only. The weight/bias blocks map to
    # (0, 0) for every grid step, so they stay resident in VMEM; the parallel axis can
    # be sharded across TensorCores (v7x megacore).
    assert B % block_b == 0, (B, block_b)
    return pl.pallas_call(
        _linear_kernel,
        out_shape=jax.ShapeDtypeStruct((B, N), x.dtype),
        grid=(B // block_b,),
        in_specs=[
            pl.BlockSpec((block_b, K), lambda i: (i, 0)),
            pl.BlockSpec((N, K), lambda i: (0, 0)),
            pl.BlockSpec((1, N), lambda i: (0, 0)),
        ],
        out_specs=pl.BlockSpec((block_b, N), lambda i: (i, 0)),
        compiler_params=pltpu.CompilerParams(dimension_semantics=("parallel",)),
        cost_estimate=cost,
    )(x, w, b2d)


if __name__ == "__main__":
    key = jax.random.PRNGKey(0)
    k_x, k_w, k_b, k_x2 = jax.random.split(key, 4)

    # Deterministic PyTorch-style init: uniform(-1/sqrt(fan_in), 1/sqrt(fan_in)),
    # weight stored in native nn.Linear (out_features, in_features) layout.
    bound = 1.0 / (COMPRESSED ** 0.5)
    w = jax.random.uniform(k_w, (BOTTLENECK, COMPRESSED), jnp.float32, -bound, bound)
    b = jax.random.uniform(k_b, (BOTTLENECK,), jnp.float32, -bound, bound)

    # --- small-batch path (single collapsed block), f32 weights: exact nn.Linear match ---
    batch = 8
    x = jax.random.normal(k_x, (batch, COMPRESSED), jnp.float32)
    y = jax.block_until_ready(channel_decoder_forward(x, w, b))
    y_ref = x @ w.T + b
    assert y.shape == (batch, BOTTLENECK)
    assert jnp.allclose(y, y_ref, atol=1e-5, rtol=1e-5)

    # --- small-batch path with bf16-streamed weight (halves dominant DMA), f32 accumulate ---
    w_bf16 = w.astype(jnp.bfloat16)
    y_bf = jax.block_until_ready(channel_decoder_forward(x, w_bf16, b))
    assert jnp.allclose(y_bf, y_ref, atol=5e-2, rtol=1e-2)

    # --- large-batch B-tiled fallback (grid over B, parallel axis, weight resident) ---
    big_batch = 512
    x_big = jax.random.normal(k_x2, (big_batch, COMPRESSED), jnp.float32)
    y_big = jax.block_until_ready(channel_decoder_forward(x_big, w, b, block_b=256))
    y_big_ref = x_big @ w.T + b
    assert y_big.shape == (big_batch, BOTTLENECK)
    assert jnp.allclose(y_big, y_big_ref, atol=1e-5, rtol=1e-5)

    print("KERNEL_OK")
</pallas_src>

<mosaic_0001>
module attributes {stable_mosaic.version = 11 : i64} {
  func.func @_linear_kernel(%arg0: memref<8x64xf32, #tpu.memory_space<vmem>>, %arg1: memref<1024x64xf32, #tpu.memory_space<vmem>>, %arg2: memref<1x1024xf32, #tpu.memory_space<vmem>>, %arg3: memref<8x1024xf32, #tpu.memory_space<vmem>>) attributes {dimension_semantics = [], scalar_prefetch = 0 : i64, scratch_operands = 0 : i64, tpu.core_type = #tpu.core_type<tc>} {
    %c0 = arith.constant 0 : index
    %c0_0 = arith.constant 0 : index
    %0 = vector.load %arg0[%c0, %c0_0] : memref<8x64xf32, #tpu.memory_space<vmem>>, vector<8x64xf32>
    %c0_1 = arith.constant 0 : index
    %c0_2 = arith.constant 0 : index
    %1 = vector.load %arg1[%c0_1, %c0_2] : memref<1024x64xf32, #tpu.memory_space<vmem>>, vector<1024x64xf32>
    %cst = arith.constant dense<0.000000e+00> : vector<8x1024xf32>
    %2 = tpu.matmul %0, %1, %cst {dimension_numbers = #tpu.dot_dimension_numbers<[1], [1], [0], [0], [0, 0, 1, 0], [], []>} : vector<8x64xf32>, vector<1024x64xf32>, vector<8x1024xf32> -> vector<8x1024xf32>
    %c0_3 = arith.constant 0 : index
    %c0_4 = arith.constant 0 : index
    %3 = vector.load %arg2[%c0_3, %c0_4] : memref<1x1024xf32, #tpu.memory_space<vmem>>, vector<1x1024xf32>
    %4 = vector.broadcast %3 : vector<1x1024xf32> to vector<8x1024xf32>
    %5 = arith.addf %2, %4 : vector<8x1024xf32>
    %c0_5 = arith.constant 0 : index
    %c0_6 = arith.constant 0 : index
    %6 = vector.load %arg3[%c0_5, %c0_6] : memref<8x1024xf32, #tpu.memory_space<vmem>>, vector<8x1024xf32>
    tpu.vector_store %arg3[%c0_5, %c0_6], %5 {strides = array<i32>} : memref<8x1024xf32, #tpu.memory_space<vmem>>, vector<8x1024xf32>,
    return
  }
}

</mosaic_0001>

<bundles_post_ra>
// kernel: channel_decoder_forward.1
= control target key start
LH: loop header
LB: loop body
LE: loop exit
PB: predicated region body
PF: predicated region fallthrough
CT: control target
= control target key end

     0   :  { %vm186_vm0 = vcmask 523264   ;;  %s1940_s0 = inlined_call_operand.vmem [shape: f32[8,64], index: 0, kind: input, shape index: {}]   ;;  %s1941_s1 = inlined_call_operand.vmem [shape: f32[1024,64], index: 1, kind: input, shape index: {}]   ;;  %s1942_s2 = inlined_call_operand.vmem [shape: f32[1,1024], index: 2, kind: input, shape index: {}]   ;;  %s1943_s3 = inlined_call_operand.hbm [shape: f32[8,1024], index: 3, kind: output, shape index: {}]  }
   0x1   :  { %v32_v0 = vld [vmem:[%s1941_s1 + $0x80] sm:$0xff]  ;;  %v33_v1 = vld [vmem:[%s1941_s1 + $0x88] sm:$0xff]  ;;  %vm1397_vm1 = vmpackc.low %vm186_vm0, %vm186_vm0 }
   0x2   :  { %v64_v2 = vld [vmem:[%s1941_s1 + $0x180] sm:$0xff]  ;;  %v1148_v3 = vpack.c.bf16 %v33_v1, %v32_v0  ;;  %v65_v5 = vld [vmem:[%s1941_s1 + $0x188] sm:$0xff]  ;;  %v34_v13 = vld [vmem:[%s1941_s1 + $0x90] sm:$0xff] }
   0x3   :  { %v16_v6 = vld [vmem:[%s1941_s1] sm:$0xff]  ;;  %v1196_v7 = vpack.c.bf16 %v65_v5, %v64_v2  ;;  %v17_v8 = vld [vmem:[%s1941_s1 + $0x8] sm:$0xff]  ;;  %v35_v14 = vld [vmem:[%s1941_s1 + $0x98] sm:$0xff] }
   0x4   :  { %v48_v9 = vld [vmem:[%s1941_s1 + $0x100] sm:$0xff]  ;;  %v49_v10 = vld [vmem:[%s1941_s1 + $0x108] sm:$0xff]  ;;  %1150 = vmatprep.subr.msk.bf16.mxu0 %vm1397_vm1, %v1148_v3  ;;  %v1151_v11 = vpack.c.bf16 %v17_v8, %v16_v6  ;;  %v66_v15 = vld [vmem:[%s1941_s1 + $0x190] sm:$0xff]  ;;  %v1154_v16 = vpack.c.bf16 %v35_v14, %v34_v13 }
   0x5   :  { %v1199_v12 = vpack.c.bf16 %v49_v10, %v48_v9  ;;  %1198 = vmatprep.subr.msk.bf16.mxu1 %vm1397_vm1, %v1196_v7  ;;  %v67_v17 = vld [vmem:[%s1941_s1 + $0x198] sm:$0xff]  ;;  %v18_v19 = vld [vmem:[%s1941_s1 + $0x10] sm:$0xff]  ;;  %v36_v23 = vld [vmem:[%s1941_s1 + $0xa0] sm:$0xff] }
   0x6   :  { %1153 = vmatpush3.bf16.xpose.msk.msra.mxu0 %vm1397_vm1, %v1151_v11  ;;  %v1202_v18 = vpack.c.bf16 %v67_v17, %v66_v15  ;;  %v19_v20 = vld [vmem:[%s1941_s1 + $0x18] sm:$0xff]  ;;  %v50_v21 = vld [vmem:[%s1941_s1 + $0x110] sm:$0xff]  ;;  %v37_v24 = vld [vmem:[%s1941_s1 + $0xa8] sm:$0xff] }
   0x7   :  { %1201 = vmatpush3.bf16.xpose.msk.msra.mxu1 %vm1397_vm1, %v1199_v12  ;;  %1156 = vmatprep.subr.msk.bf16.mxu0 %vm1397_vm1, %v1154_v16  ;;  %v51_v22 = vld [vmem:[%s1941_s1 + $0x118] sm:$0xff]  ;;  %v68_v25 = vld [vmem:[%s1941_s1 + $0x1a0] sm:$0xff]  ;;  %v69_v26 = vld [vmem:[%s1941_s1 + $0x1a8] sm:$0xff]  ;;  %v1157_v27 = vpack.c.bf16 %v19_v20, %v18_v19  ;;  %v1160_v29 = vpack.c.bf16 %v37_v24, %v36_v23 }
   0x8   :  { %1204 = vmatprep.subr.msk.bf16.mxu1 %vm1397_vm1, %v1202_v18  ;;  %v1205_v28 = vpack.c.bf16 %v51_v22, %v50_v21  ;;  %v1208_v30 = vpack.c.bf16 %v69_v26, %v68_v25  ;;  %v20_v31 = vld [vmem:[%s1941_s1 + $0x20] sm:$0xff]  ;;  %v21_v32 = vld [vmem:[%s1941_s1 + $0x28] sm:$0xff]  ;;  %v38_v35 = vld [vmem:[%s1941_s1 + $0xb0] sm:$0xff] }
   0x9   :  { %v52_v33 = vld [vmem:[%s1941_s1 + $0x120] sm:$0xff]  ;;  %v53_v34 = vld [vmem:[%s1941_s1 + $0x128] sm:$0xff]  ;;  %v39_v36 = vld [vmem:[%s1941_s1 + $0xb8] sm:$0xff]  ;;  %v1163_v39 = vpack.c.bf16 %v21_v32, %v20_v31 }
   0xa   :  { %v70_v37 = vld [vmem:[%s1941_s1 + $0x1b0] sm:$0xff]  ;;  %v71_v38 = vld [vmem:[%s1941_s1 + $0x1b8] sm:$0xff]  ;;  %v1211_v40 = vpack.c.bf16 %v53_v34, %v52_v33  ;;  %v1166_v41 = vpack.c.bf16 %v39_v36, %v38_v35  ;;  %v1509_v45 = vld [vmem:[%s1940_s0] sm:$0xff] }
   0xb   :  { %v1214_v42 = vpack.c.bf16 %v71_v38, %v70_v37  ;;  %v22_v43 = vld [vmem:[%s1941_s1 + $0x30] sm:$0xff]  ;;  %v23_v44 = vld [vmem:[%s1941_s1 + $0x38] sm:$0xff]  ;;  %v40_v48 = vld [vmem:[%s1941_s1 + $0xc0] sm:$0xff]  ;;  %1044 = vmatprep.mubr.msk.f32.mxu0 %vm186_vm0, %v1509_v45  ;;  %1078 = vmatprep.mubr.msk.f32.mxu1 %vm186_vm0, %v1509_v45 }
   0xc   :  { %v54_v46 = vld [vmem:[%s1941_s1 + $0x130] sm:$0xff]  ;;  %v55_v47 = vld [vmem:[%s1941_s1 + $0x138] sm:$0xff]  ;;  %v41_v49 = vld [vmem:[%s1941_s1 + $0xc8] sm:$0xff]  ;;  %v1169_v52 = vpack.c.bf16 %v23_v44, %v22_v43 }
   0xd   :  { %v72_v50 = vld [vmem:[%s1941_s1 + $0x1c0] sm:$0xff]  ;;  %v73_v51 = vld [vmem:[%s1941_s1 + $0x1c8] sm:$0xff]  ;;  %v1217_v53 = vpack.c.bf16 %v55_v47, %v54_v46  ;;  %v1172_v54 = vpack.c.bf16 %v41_v49, %v40_v48  ;;  %v42_v60 = vld [vmem:[%s1941_s1 + $0xd0] sm:$0xff] }
   0xe   :  { %1159 = vmatpush3.bf16.xpose.msk.msra.mxu0 %vm1397_vm1, %v1157_v27  ;;  %v1220_v55 = vpack.c.bf16 %v73_v51, %v72_v50  ;;  %v24_v56 = vld [vmem:[%s1941_s1 + $0x40] sm:$0xff]  ;;  %v25_v57 = vld [vmem:[%s1941_s1 + $0x48] sm:$0xff]  ;;  %v43_v61 = vld [vmem:[%s1941_s1 + $0xd8] sm:$0xff] }
   0xf   :  { %1207 = vmatpush3.bf16.xpose.msk.msra.mxu1 %vm1397_vm1, %v1205_v28  ;;  %1162 = vmatprep.subr.msk.bf16.mxu0 %vm1397_vm1, %v1160_v29  ;;  %v56_v58 = vld [vmem:[%s1941_s1 + $0x140] sm:$0xff]  ;;  %v57_v59 = vld [vmem:[%s1941_s1 + $0x148] sm:$0xff]  ;;  %v74_v62 = vld [vmem:[%s1941_s1 + $0x1d0] sm:$0xff]  ;;  %v1175_v0 = vpack.c.bf16 %v25_v57, %v24_v56  ;;  %v1178_v2 = vpack.c.bf16 %v43_v61, %v42_v60 }
  0x10   :  { %1210 = vmatprep.subr.msk.bf16.mxu1 %vm1397_vm1, %v1208_v30  ;;  %v75_v63 = vld [vmem:[%s1941_s1 + $0x1d8] sm:$0xff]  ;;  %v1223_v1 = vpack.c.bf16 %v57_v59, %v56_v58  ;;  %v26_v5 = vld [vmem:[%s1941_s1 + $0x50] sm:$0xff]  ;;  %v44_v9 = vld [vmem:[%s1941_s1 + $0xe0] sm:$0xff] }
  0x11   :  { %v1226_v3 = vpack.c.bf16 %v75_v63, %v74_v62  ;;  %v27_v6 = vld [vmem:[%s1941_s1 + $0x58] sm:$0xff]  ;;  %v58_v7 = vld [vmem:[%s1941_s1 + $0x150] sm:$0xff]  ;;  %v45_v10 = vld [vmem:[%s1941_s1 + $0xe8] sm:$0xff] }
  0x12   :  { %v59_v8 = vld [vmem:[%s1941_s1 + $0x158] sm:$0xff]  ;;  %v76_v11 = vld [vmem:[%s1941_s1 + $0x1e0] sm:$0xff]  ;;  %v77_v12 = vld [vmem:[%s1941_s1 + $0x1e8] sm:$0xff]  ;;  %v1181_v13 = vpack.c.bf16 %v27_v6, %v26_v5  ;;  %v1184_v15 = vpack.c.bf16 %v45_v10, %v44_v9 }
  0x13   :  { %v1229_v14 = vpack.c.bf16 %v59_v8, %v58_v7  ;;  %v1232_v16 = vpack.c.bf16 %v77_v12, %v76_v11 }
  0x16   :  { %1165 = vmatpush3.bf16.xpose.msk.msra.mxu0 %vm1397_vm1, %v1163_v39 }
  0x17   :  { %1213 = vmatpush3.bf16.xpose.msk.msra.mxu1 %vm1397_vm1, %v1211_v40  ;;  %1168 = vmatprep.subr.msk.bf16.mxu0 %vm1397_vm1, %v1166_v41 }
  0x18   :  { %1216 = vmatprep.subr.msk.bf16.mxu1 %vm1397_vm1, %v1214_v42 }
  0x1e   :  { %1171 = vmatpush3.bf16.xpose.msk.msra.mxu0 %vm1397_vm1, %v1169_v52 }
  0x1f   :  { %1219 = vmatpush3.bf16.xpose.msk.msra.mxu1 %vm1397_vm1, %v1217_v53  ;;  %1174 = vmatprep.subr.msk.bf16.mxu0 %vm1397_vm1, %v1172_v54 }
  0x20   :  { %1222 = vmatprep.subr.msk.bf16.mxu1 %vm1397_vm1, %v1220_v55 }
  0x26   :  { %1177 = vmatpush3.bf16.xpose.msk.msra.mxu0 %vm1397_vm1, %v1175_v0 }
  0x27   :  { %1225 = vmatpush3.bf16.xpose.msk.msra.mxu1 %vm1397_vm1, %v1223_v1  ;;  %1180 = vmatprep.subr.msk.bf16.mxu0 %vm1397_vm1, %v1178_v2 }
  0x28   :  { %1228 = vmatprep.subr.msk.bf16.mxu1 %vm1397_vm1, %v1226_v3 }
  0x29   :  { %8 = vsyncpa [#allocation3], 0  ;;  %v28_v17 = vld [vmem:[%s1941_s1 + $0x60] sm:$0xff]  ;;  %v29_v18 = vld [vmem:[%s1941_s1 + $0x68] sm:$0xff] }
  0x2a   :  { %v60_v19 = vld [vmem:[%s1941_s1 + $0x160] sm:$0xff]  ;;  %v61_v20 = vld [vmem:[%s1941_s1 + $0x168] sm:$0xff]  ;;  %v46_v21 = vld [vmem:[%s1941_s1 + $0xf0] sm:$0xff]  ;;  %v1187_v25 = vpack.c.bf16 %v29_v18, %v28_v17 }
  0x2b   :  { %v47_v22 = vld [vmem:[%s1941_s1 + $0xf8] sm:$0xff]  ;;  %v78_v23 = vld [vmem:[%s1941_s1 + $0x1f0] sm:$0xff]  ;;  %v1235_v26 = vpack.c.bf16 %v61_v20, %v60_v19  ;;  %v96_v33 = vld [vmem:[%s1941_s1 + $0x280] sm:$0xff] }
  0x2c   :  { %v79_v24 = vld [vmem:[%s1941_s1 + $0x1f8] sm:$0xff]  ;;  %v1190_v27 = vpack.c.bf16 %v47_v22, %v46_v21  ;;  %v30_v29 = vld [vmem:[%s1941_s1 + $0x70] sm:$0xff]  ;;  %v97_v34 = vld [vmem:[%s1941_s1 + $0x288] sm:$0xff] }
  0x2d   :  { %v1238_v28 = vpack.c.bf16 %v79_v24, %v78_v23  ;;  %v31_v30 = vld [vmem:[%s1941_s1 + $0x78] sm:$0xff]  ;;  %v62_v31 = vld [vmem:[%s1941_s1 + $0x170] sm:$0xff]  ;;  %v128_v35 = vld [vmem:[%s1941_s1 + $0x380] sm:$0xff]  ;;  %v1244_v39 = vpack.c.bf16 %v97_v34, %v96_v33 }
  0x2e   :  { %1183 = vmatpush3.bf16.xpose.msk.msra.mxu0 %vm1397_vm1, %v1181_v13  ;;  %v63_v32 = vld [vmem:[%s1941_s1 + $0x178] sm:$0xff]  ;;  %v129_v36 = vld [vmem:[%s1941_s1 + $0x388] sm:$0xff]  ;;  %v1193_v37 = vpack.c.bf16 %v31_v30, %v30_v29  ;;  %v80_v41 = vld [vmem:[%s1941_s1 + $0x200] sm:$0xff] }
  0x2f   :  { %1231 = vmatpush3.bf16.xpose.msk.msra.mxu1 %vm1397_vm1, %v1229_v14  ;;  %1186 = vmatprep.subr.msk.bf16.mxu0 %vm1397_vm1, %v1184_v15  ;;  %v1241_v38 = vpack.c.bf16 %v63_v32, %v62_v31  ;;  %v1292_v40 = vpack.c.bf16 %v129_v36, %v128_v35  ;;  %v81_v42 = vld [vmem:[%s1941_s1 + $0x208] sm:$0xff]  ;;  %v112_v43 = vld [vmem:[%s1941_s1 + $0x300] sm:$0xff]  ;;  %v98_v46 = vld [vmem:[%s1941_s1 + $0x290] sm:$0xff] }
  0x30   :  { %1234 = vmatprep.subr.msk.bf16.mxu1 %vm1397_vm1, %v1232_v16  ;;  %v113_v44 = vld [vmem:[%s1941_s1 + $0x308] sm:$0xff]  ;;  %v99_v47 = vld [vmem:[%s1941_s1 + $0x298] sm:$0xff]  ;;  %v130_v48 = vld [vmem:[%s1941_s1 + $0x390] sm:$0xff]  ;;  %v1247_v50 = vpack.c.bf16 %v81_v42, %v80_v41 }
  0x31   :  { %v131_v49 = vld [vmem:[%s1941_s1 + $0x398] sm:$0xff]  ;;  %v1295_v51 = vpack.c.bf16 %v113_v44, %v112_v43  ;;  %v1250_v52 = vpack.c.bf16 %v99_v47, %v98_v46  ;;  %v82_v54 = vld [vmem:[%s1941_s1 + $0x210] sm:$0xff]  ;;  %v100_v58 = vld [vmem:[%s1941_s1 + $0x2a0] sm:$0xff] }
  0x32   :  { %v1298_v53 = vpack.c.bf16 %v131_v49, %v130_v48  ;;  %v83_v55 = vld [vmem:[%s1941_s1 + $0x218] sm:$0xff]  ;;  %v114_v56 = vld [vmem:[%s1941_s1 + $0x310] sm:$0xff]  ;;  %v101_v59 = vld [vmem:[%s1941_s1 + $0x2a8] sm:$0xff] }
  0x33   :  { %v115_v57 = vld [vmem:[%s1941_s1 + $0x318] sm:$0xff]  ;;  %v132_v60 = vld [vmem:[%s1941_s1 + $0x3a0] sm:$0xff]  ;;  %v133_v61 = vld [vmem:[%s1941_s1 + $0x3a8] sm:$0xff]  ;;  %v1253_v62 = vpack.c.bf16 %v83_v55, %v82_v54  ;;  %v1256_v0 = vpack.c.bf16 %v101_v59, %v100_v58 }
  0x34   :  { %v1301_v63 = vpack.c.bf16 %v115_v57, %v114_v56  ;;  %v1304_v1 = vpack.c.bf16 %v133_v61, %v132_v60  ;;  %v84_v2 = vld [vmem:[%s1941_s1 + $0x220] sm:$0xff]  ;;  %v85_v3 = vld [vmem:[%s1941_s1 + $0x228] sm:$0xff]  ;;  %v102_v7 = vld [vmem:[%s1941_s1 + $0x2b0] sm:$0xff] }
  0x35   :  { %v116_v5 = vld [vmem:[%s1941_s1 + $0x320] sm:$0xff]  ;;  %v117_v6 = vld [vmem:[%s1941_s1 + $0x328] sm:$0xff]  ;;  %v103_v8 = vld [vmem:[%s1941_s1 + $0x2b8] sm:$0xff]  ;;  %v1259_v11 = vpack.c.bf16 %v85_v3, %v84_v2 }
  0x36   :  { %1189 = vmatpush3.bf16.xpose.msk.msra.mxu0 %vm1397_vm1, %v1187_v25  ;;  %v134_v9 = vld [vmem:[%s1941_s1 + $0x3b0] sm:$0xff]  ;;  %v135_v10 = vld [vmem:[%s1941_s1 + $0x3b8] sm:$0xff]  ;;  %v1307_v12 = vpack.c.bf16 %v117_v6, %v116_v5  ;;  %v1262_v13 = vpack.c.bf16 %v103_v8, %v102_v7  ;;  %v104_v19 = vld [vmem:[%s1941_s1 + $0x2c0] sm:$0xff]  ;;  %v146_v7 = vlaneseq }
  0x37   :  { %1237 = vmatpush3.bf16.xpose.msk.msra.mxu1 %vm1397_vm1, %v1235_v26  ;;  %1192 = vmatprep.subr.msk.bf16.mxu0 %vm1397_vm1, %v1190_v27  ;;  %v1310_v14 = vpack.c.bf16 %v135_v10, %v134_v9  ;;  %v86_v15 = vld [vmem:[%s1941_s1 + $0x230] sm:$0xff]  ;;  %v87_v16 = vld [vmem:[%s1941_s1 + $0x238] sm:$0xff]  ;;  %v105_v20 = vld [vmem:[%s1941_s1 + $0x2c8] sm:$0xff] }
  0x38   :  { %1240 = vmatprep.subr.msk.bf16.mxu1 %vm1397_vm1, %v1238_v28  ;;  %v118_v17 = vld [vmem:[%s1941_s1 + $0x330] sm:$0xff]  ;;  %v119_v18 = vld [vmem:[%s1941_s1 + $0x338] sm:$0xff]  ;;  %v136_v21 = vld [vmem:[%s1941_s1 + $0x3c0] sm:$0xff]  ;;  %v1265_v23 = vpack.c.bf16 %v87_v16, %v86_v15  ;;  %v1268_v25 = vpack.c.bf16 %v105_v20, %v104_v19  ;;  %v147_v8 = vshrl.u32 %v146_v7, 7 }
  0x39   :  { %v137_v22 = vld [vmem:[%s1941_s1 + $0x3c8] sm:$0xff]  ;;  %v1313_v24 = vpack.c.bf16 %v119_v18, %v118_v17  ;;  %v88_v27 = vld [vmem:[%s1941_s1 + $0x240] sm:$0xff]  ;;  %v106_v31 = vld [vmem:[%s1941_s1 + $0x2d0] sm:$0xff] }
  0x3a   :  { %v1316_v26 = vpack.c.bf16 %v137_v22, %v136_v21  ;;  %v89_v28 = vld [vmem:[%s1941_s1 + $0x248] sm:$0xff]  ;;  %v120_v29 = vld [vmem:[%s1941_s1 + $0x340] sm:$0xff]  ;;  %v107_v32 = vld [vmem:[%s1941_s1 + $0x2d8] sm:$0xff]  ;;  %v148_v9 = vsub.s32 0, %v147_v8  ;;  %v156_v10 = vsub.s32 2, %v147_v8 }
  0x3b   :  { %v121_v30 = vld [vmem:[%s1941_s1 + $0x348] sm:$0xff]  ;;  %v138_v33 = vld [vmem:[%s1941_s1 + $0x3d0] sm:$0xff]  ;;  %v139_v34 = vld [vmem:[%s1941_s1 + $0x3d8] sm:$0xff]  ;;  %v1271_v35 = vpack.c.bf16 %v89_v28, %v88_v27  ;;  %v176_v27 = vsub.s32 7, %v147_v8 }
  0x3c   :  { %v1319_v36 = vpack.c.bf16 %v121_v30, %v120_v29  ;;  %v122_v41 = vld [vmem:[%s1941_s1 + $0x350] sm:$0xff]  ;;  %v123_v42 = vld [vmem:[%s1941_s1 + $0x358] sm:$0xff]  ;;  %v108_v43 = vld [vmem:[%s1941_s1 + $0x2e0] sm:$0xff] }
  0x3d   :  { %v109_v44 = vld [vmem:[%s1941_s1 + $0x2e8] sm:$0xff]  ;;  %v140_v46 = vld [vmem:[%s1941_s1 + $0x3e0] sm:$0xff]  ;;  %v1325_v49 = vpack.c.bf16 %v123_v42, %v122_v41  ;;  %v110_v56 = vld [vmem:[%s1941_s1 + $0x2f0] sm:$0xff] }
  0x3e   :  { %1195 = vmatpush3.bf16.xpose.msk.msra.mxu0 %vm1397_vm1, %v1193_v37  ;;  %v1274_v37 = vpack.c.bf16 %v107_v32, %v106_v31  ;;  %v141_v47 = vld [vmem:[%s1941_s1 + $0x3e8] sm:$0xff]  ;;  %v124_v54 = vld [vmem:[%s1941_s1 + $0x360] sm:$0xff]  ;;  %v111_v57 = vld [vmem:[%s1941_s1 + $0x2f8] sm:$0xff] }
  0x3f   :  { %1243 = vmatpush3.bf16.xpose.msk.msra.mxu1 %vm1397_vm1, %v1241_v38  ;;  %1246 = vmatprep.subr.msk.bf16.mxu0 %vm1397_vm1, %v1244_v39  ;;  %v1322_v38 = vpack.c.bf16 %v139_v34, %v138_v33  ;;  %v90_v39 = vld [vmem:[%s1941_s1 + $0x250] sm:$0xff]  ;;  %v125_v55 = vld [vmem:[%s1941_s1 + $0x368] sm:$0xff]  ;;  %v143_v59 = vld [vmem:[%s1941_s1 + $0x3f8] sm:$0xff] }
  0x40   :  { %1294 = vmatprep.subr.msk.bf16.mxu1 %vm1397_vm1, %v1292_v40  ;;  %v91_v40 = vld [vmem:[%s1941_s1 + $0x258] sm:$0xff]  ;;  %v142_v58 = vld [vmem:[%s1941_s1 + $0x3f0] sm:$0xff]  ;;  %v1331_v61 = vpack.c.bf16 %v125_v55, %v124_v54 }
  0x41   :  { %v1277_v48 = vpack.c.bf16 %v91_v40, %v90_v39  ;;  %v126_v2 = vld [vmem:[%s1941_s1 + $0x370] sm:$0xff]  ;;  %v127_v3 = vld [vmem:[%s1941_s1 + $0x378] sm:$0xff] }
  0x42   :  { %v1337_v6 = vpack.c.bf16 %v127_v3, %v126_v2 }
  0x45   :  { %1045 = vmatmul.mubr.msk.f32.vlgmr.msra.gmra.mrb[0].mxu0 %vm186_vm0, %v1509_v45 }
  0x46   :  { %1079 = vmatmul.mubr.msk.f32.vlgmr.msra.gmra.mrb[0].mxu1 %vm186_vm0, %v1509_v45  ;;  %1249 = vmatpush3.bf16.xpose.msk.msra.mxu0 %vm1397_vm1, %v1247_v50  ;;  %v1280_v50 = vpack.c.bf16 %v109_v44, %v108_v43 }
  0x47   :  { %1297 = vmatpush3.bf16.xpose.msk.msra.mxu1 %vm1397_vm1, %v1295_v51  ;;  %1252 = vmatprep.subr.msk.bf16.mxu0 %vm1397_vm1, %v1250_v52  ;;  %v1328_v51 = vpack.c.bf16 %v141_v47, %v140_v46  ;;  %v92_v52 = vld [vmem:[%s1941_s1 + $0x260] sm:$0xff] }
  0x48   :  { %1300 = vmatprep.subr.msk.bf16.mxu1 %vm1397_vm1, %v1298_v53  ;;  %1112 = vmatprep.mubr.msk.f32.mxu0 %vm186_vm0, %v1509_v45  ;;  %v93_v53 = vld [vmem:[%s1941_s1 + $0x268] sm:$0xff] }
  0x49   :  { %1146 = vmatprep.mubr.msk.f32.mxu1 %vm186_vm0, %v1509_v45  ;;  %v1283_v60 = vpack.c.bf16 %v93_v53, %v92_v52 }
  0x4e   :  { %1255 = vmatpush3.bf16.xpose.msk.msra.mxu0 %vm1397_vm1, %v1253_v62  ;;  %v1286_v62 = vpack.c.bf16 %v111_v57, %v110_v56 }
  0x4f   :  { %1303 = vmatpush3.bf16.xpose.msk.msra.mxu1 %vm1397_vm1, %v1301_v63  ;;  %1258 = vmatprep.subr.msk.bf16.mxu0 %vm1397_vm1, %v1256_v0  ;;  %v1334_v63 = vpack.c.bf16 %v143_v59, %v142_v58  ;;  %v94_v0 = vld [vmem:[%s1941_s1 + $0x270] sm:$0xff] }
  0x50   :  { %1306 = vmatprep.subr.msk.bf16.mxu1 %vm1397_vm1, %v1304_v1  ;;  %v95_v1 = vld [vmem:[%s1941_s1 + $0x278] sm:$0xff] }
  0x51   :  { %v1289_v5 = vpack.c.bf16 %v95_v1, %v94_v0 }
  0x56   :  { %1261 = vmatpush3.bf16.xpose.msk.msra.mxu0 %vm1397_vm1, %v1259_v11  ;;  %v144_v11 = vld [vmem:[%s1942_s2] sm:$0xff]  ;;  %s1365_s2 = smov [#allocation2]  }
  0x57   :  { %1309 = vmatpush3.bf16.xpose.msk.msra.mxu1 %vm1397_vm1, %v1307_v12  ;;  %1264 = vmatprep.subr.msk.bf16.mxu0 %vm1397_vm1, %v1262_v13  ;;  %v152_v12 = vsub.s32 1, %v147_v8  ;;  %v160_v13 = vsub.s32 3, %v147_v8  ;;  %v157_v15 = vrot.slane %v144_v11, %v156_v10  ;;  %v177_v31 = vrot.slane %v144_v11, %v176_v27  ;;  %s872_s21 = sshll.u32 %s1365_s2, 4  ;;  %s873_s21 = int_to_ptr.vmem [resolvable:$true] %s872_s21 }
  0x58   :  { %1312 = vmatprep.subr.msk.bf16.mxu1 %vm1397_vm1, %v1310_v14  ;;  %v149_v14 = vrot.slane %v144_v11, %v148_v9  ;;  %s1341_s22 = scalar_lea.vmem %s873_s21, 1024  ;;  %p1346_p1 = scmp.lt.s32.totalorder %s873_s21, %s873_s21 }
  0x59   :  { %v153_v4 = vrot.slane %v144_v11, %v152_v12  ;;  %v161_v16 = vrot.slane %v144_v11, %v160_v13  ;;  %p1342_p0 = scmp.ne.s32.totalorder %s873_s21, %s1341_s22  ;;  %p1347_p2 = scmp.lt.s32.totalorder %s1341_s22, %s1341_s22 }
  0x5b   :  { %p1348_p3 = por %p1347_p2, %p1346_p1 }
  0x5d   :  { %p1349_p4 = pnand %p1348_p3, %p1342_p0 }
  0x5e   :  { %1267 = vmatpush3.bf16.xpose.msk.msra.mxu0 %vm1397_vm1, %v1265_v23 }
  0x5f   :  { %1315 = vmatpush3.bf16.xpose.msk.msra.mxu1 %vm1397_vm1, %v1313_v24  ;;  %1270 = vmatprep.subr.msk.bf16.mxu0 %vm1397_vm1, %v1268_v25  ;;  %v164_v24 = vsub.s32 4, %v147_v8  ;;  %v172_v25 = vsub.s32 6, %v147_v8 }
  0x60   :  { %1318 = vmatprep.subr.msk.bf16.mxu1 %vm1397_vm1, %v1316_v26  ;;  %v168_v26 = vsub.s32 5, %v147_v8 }
  0x61   :  { %v165_v28 = vrot.slane %v144_v11, %v164_v24  ;;  %v173_v29 = vrot.slane %v144_v11, %v172_v25 }
  0x62   :  { %v169_v30 = vrot.slane %v144_v11, %v168_v26 }
  0x66   :  { %1273 = vmatpush3.bf16.xpose.msk.msra.mxu0 %vm1397_vm1, %v1271_v35 }
  0x67   :  { %1321 = vmatpush3.bf16.xpose.msk.msra.mxu1 %vm1397_vm1, %v1319_v36  ;;  %1276 = vmatprep.subr.msk.bf16.mxu0 %vm1397_vm1, %v1274_v37 }
  0x68   :  { %1324 = vmatprep.subr.msk.bf16.mxu1 %vm1397_vm1, %v1322_v38 }
  0x6e   :  { %1279 = vmatpush3.bf16.xpose.msk.msra.mxu0 %vm1397_vm1, %v1277_v48 }
  0x6f   :  { %1327 = vmatpush3.bf16.xpose.msk.msra.mxu1 %vm1397_vm1, %v1325_v49  ;;  %1282 = vmatprep.subr.msk.bf16.mxu0 %vm1397_vm1, %v1280_v50 }
  0x70   :  { %1330 = vmatprep.subr.msk.bf16.mxu1 %vm1397_vm1, %v1328_v51 }
  0x76   :  { %1285 = vmatpush3.bf16.xpose.msk.msra.mxu0 %vm1397_vm1, %v1283_v60 }
  0x77   :  { %1333 = vmatpush3.bf16.xpose.msk.msra.mxu1 %vm1397_vm1, %v1331_v61  ;;  %1288 = vmatprep.subr.msk.bf16.mxu0 %vm1397_vm1, %v1286_v62 }
  0x78   :  { %1336 = vmatprep.subr.msk.bf16.mxu1 %vm1397_vm1, %v1334_v63 }
  0x7e   :  { %1291 = vmatpush3.bf16.xpose.msk.msra.mxu0 %vm1397_vm1, %v1289_v5 }
  0x7f   :  { %1339 = vmatpush3.bf16.xpose.msk.msra.mxu1 %vm1397_vm1, %v1337_v6 }
  0x85   :  { %1113 = vmatmul.mubr.msk.f32.vlgmr.msra.gmra.mrb[2].mxu0 %vm186_vm0, %v1509_v45 }
  0x86   :  { %1147 = vmatmul.mubr.msk.f32.vlgmr.msra.gmra.mrb[2].mxu1 %vm186_vm0, %v1509_v45 }
 0x118   :  { %v640_v17 = vpop.f32.mrb[0].mxu0 }
 0x119   :  { %v711_v18 = vpop.f32.mrb[0].mxu1  ;;  %v641_v19 = vadd.f32 %v640_v17, %v149_v14  ;;  %v642_v21 = vpop.f32.mrb[1].mxu0 }
 0x11a   :  { %v712_v20 = vadd.f32 %v711_v18, %v157_v15  ;;  %v713_v45 = vpop.f32.mrb[1].mxu1  ;;  %v643_v22 = vadd.f32 %v642_v21, %v153_v4 }
 0x11b   :  { %v714_v23 = vadd.f32 %v713_v45, %v161_v16  ;;  %858 = vst [vmem:[#allocation2] sm:$0xff] %v641_v19 }
 0x11c   :  { %860 = vst [vmem:[#allocation2 + $0x10] sm:$0xff] %v712_v20  ;;  %859 = vst [vmem:[#allocation2 + $0x8] sm:$0xff] %v643_v22 }
 0x11d   :  { %861 = vst [vmem:[#allocation2 + $0x18] sm:$0xff] %v714_v23 }
 0x158   :  { %v782_v32 = vpop.f32.mrb[2].mxu0 }
 0x159   :  { %v853_v33 = vpop.f32.mrb[2].mxu1  ;;  %v783_v34 = vadd.f32 %v782_v32, %v165_v28  ;;  %v784_v36 = vpop.f32.mrb[3].mxu0 }
 0x15a   :  { %v854_v35 = vadd.f32 %v853_v33, %v173_v29  ;;  %v855_v37 = vpop.f32.mrb[3].mxu1  ;;  %v785_v38 = vadd.f32 %v784_v36, %v169_v30 }
 0x15b   :  { %v856_v39 = vadd.f32 %v855_v37, %v177_v31  ;;  %862 = vst [vmem:[#allocation2 + $0x20] sm:$0xff] %v783_v34 }
 0x15c   :  { %864 = vst [vmem:[#allocation2 + $0x30] sm:$0xff] %v854_v35  ;;  %863 = vst [vmem:[#allocation2 + $0x28] sm:$0xff] %v785_v38 }
 0x15d   :  { %865 = vst [vmem:[#allocation2 + $0x38] sm:$0xff] %v856_v39 }
 0x15e   :  { %1352 = shalt.err (!%p1349_p4)
}
 0x15f   :  { %s1353_s25 = scalar_lea.hbm %s1943_s3, 1024 }
 0x160   :  { %p1354_p5 = scmp.ne.s32.totalorder %s1943_s3, %s1353_s25  ;;  %p1357_p6 = scmp.lt.u32.totalorder %s1353_s25, %s1943_s3 }
 0x162   :  { %p1359_p7 = pnand %p1357_p6, %p1354_p5 }
 0x164   :  { %1362 = shalt.err (!%p1359_p7)
}
 0x165   :  { %875 = dma.vmem_to_hbm [thread:$0]  %s873_s21, 1024, %s1943_s3, [#allocation3]  }
 0x166   :  { %1363 = dma.done.wait [#allocation3], 1024  }
 0x167   :  { %1364 = vsyncadd [#allocation3], 4294966272 }
 0x168   :  { %879 = vsyncpa [#allocation3], 1 }

</bundles_post_ra>
